<compile_context>
chip_gen: v7x
topology: tpu7x:2x2x1
jax: 0.10.0
libtpu: 0.0.40
codegen_flags: <defaults>
</compile_context>

<pallas_src>
import functools

import jax
import jax.numpy as jnp
from jax import lax
from jax.experimental import pallas as pl
from jax.experimental.pallas import tpu as pltpu


def _round_up(x, m):
    return (x + m - 1) // m * m


_LANE_COLS = 512      # lane-dense width for flattened reduction/elementwise kernels
_ROW_BLOCK = 256      # rows per grid step for those kernels


# ----------------------------------------------------------------------------
# Fused conv3x3 + bias + ReLU  (NHWC, bf16 -> MXU, f32 accumulation)
# ----------------------------------------------------------------------------

def _conv3x3_kernel(xp_ref, w_ref, b_ref, o_ref, xwin, sem, *, tr, wp):
    nb = pl.program_id(0)
    r = pl.program_id(1)
    # Manually DMA one contiguous halo window ((tr+3) padded rows) from HBM.
    cp = pltpu.make_async_copy(
        xp_ref.at[nb, pl.ds(r * tr * wp, (tr + 3) * wp)], xwin, sem)
    cp.start()
    cp.wait()

    xf = xwin[...].astype(jnp.float32)           # ((tr+3)*wp, Cin)
    m = tr * wp
    cout = o_ref.shape[-1]
    acc = jnp.zeros((m, cout), jnp.float32)
    for ky in range(3):
        for kx in range(3):
            off = ky * wp + kx                   # static tap offset in flat rows
            a = xf[off:off + m, :].astype(jnp.bfloat16)
            acc = acc + jnp.dot(a, w_ref[ky * 3 + kx],
                                preferred_element_type=jnp.float32)
    out = jnp.maximum(acc + b_ref[...], 0.0)
    o_ref[0] = out.astype(o_ref.dtype)


def conv3x3_relu_nhwc(x, w, b):
    """x: (Nb, H, W, Cin), w: (Cout, Cin, 3, 3), b: (Cout,) -> (Nb, H, W, Cout)."""
    Nb, H, W, Cin = x.shape
    Cout = w.shape[0]
    Wp = W + 2
    if H <= 32:
        tr, Hp = H, H
    else:
        tr = max(8, min(_ROW_BLOCK, 2048 // Wp) // 8 * 8)
        Hp = _round_up(H, tr)
    nr = Hp // tr
    # 1-px conv halo + extra zero rows so row tiles & tap slices stay in bounds.
    xp = jnp.pad(x.astype(jnp.bfloat16),
                 ((0, 0), (1, Hp - H + 2), (1, 1), (0, 0)))   # (Nb, Hp+3, Wp, Cin)
    xp_flat = xp.reshape(Nb, (Hp + 3) * Wp, Cin)
    wt = jnp.transpose(w, (2, 3, 1, 0)).reshape(9, Cin, Cout).astype(jnp.bfloat16)
    bias = b.reshape(1, Cout).astype(jnp.float32)

    m = tr * Wp
    kern = functools.partial(_conv3x3_kernel, tr=tr, wp=Wp)
    out_flat = pl.pallas_call(
        kern,
        out_shape=jax.ShapeDtypeStruct((Nb, Hp * Wp, Cout), jnp.bfloat16),
        grid=(Nb, nr),
        in_specs=[
            pl.BlockSpec(memory_space=pl.ANY),                       # input stays in HBM
            pl.BlockSpec((9, Cin, Cout), lambda nb, r: (0, 0, 0)),   # tap weights (resident)
            pl.BlockSpec((1, Cout), lambda nb, r: (0, 0)),           # bias (resident)
        ],
        out_specs=pl.BlockSpec((1, m, Cout), lambda nb, r: (nb, r, 0)),
        scratch_shapes=[pltpu.VMEM(((tr + 3) * Wp, Cin), jnp.bfloat16),
                        pltpu.SemaphoreType.DMA],
        compiler_params=pltpu.CompilerParams(
            dimension_semantics=("parallel", "arbitrary")),
    )(xp_flat, wt, bias)
    return out_flat.reshape(Nb, Hp, Wp, Cout)[:, :H, :W, :]


def maxpool2x2_nhwc(x):
    n, h, w, c = x.shape
    return x.reshape(n, h // 2, 2, w // 2, 2, c).max(axis=(2, 4))


# ----------------------------------------------------------------------------
# VGG16 feature extractor (first 3 pooling stages), random init
# ----------------------------------------------------------------------------

def init_vgg_params(key):
    # TODO(synk): pretrained VGG16 weights replaced by deterministic random init.
    stages = [
        [(3, 64), (64, 64)],
        [(64, 128), (128, 128)],
        [(128, 256), (256, 256), (256, 256)],
    ]
    params = []
    for stage in stages:
        layer_params = []
        for cin, cout in stage:
            key, k1, k2 = jax.random.split(key, 3)
            std = (2.0 / (cin * 9)) ** 0.5
            w = jax.random.normal(k1, (cout, cin, 3, 3), jnp.float32) * std
            b = jax.random.normal(k2, (cout,), jnp.float32) * 0.01
            layer_params.append((w, b))
        params.append(layer_params)
    return params


def vgg_extract(x_nhwc, params):
    feats = []
    h = x_nhwc
    for stage in params:
        for w, b in stage:
            h = conv3x3_relu_nhwc(h, w, b)
        h = maxpool2x2_nhwc(h)
        feats.append(h)
    return feats


# ----------------------------------------------------------------------------
# Gram matrix: L-tiled accumulation on the MXU
# ----------------------------------------------------------------------------

def _gram_kernel(f_ref, o_ref, acc_ref, *, scale):
    l = pl.program_id(1)

    @pl.when(l == 0)
    def _():
        acc_ref[...] = jnp.zeros_like(acc_ref)

    f = f_ref[0].astype(jnp.float32)                        # (tl, C)
    acc_ref[...] += lax.dot_general(
        f, f, (((0,), (0,)), ((), ())), preferred_element_type=jnp.float32)

    @pl.when(l == pl.num_programs(1) - 1)
    def _():
        o_ref[0] = acc_ref[...] * scale


def gram_matrix_nhwc(feat):
    nb, h, w, c = feat.shape
    L = h * w
    f = feat.reshape(nb, L, c)
    tl = min(512, _round_up(L, 8))
    lp = _round_up(L, tl)
    if lp != L:
        f = jnp.pad(f, ((0, 0), (0, lp - L), (0, 0)))       # zero rows: no gram effect
    nl = lp // tl
    kern = functools.partial(_gram_kernel, scale=1.0 / (c * h * w))
    return pl.pallas_call(
        kern,
        out_shape=jax.ShapeDtypeStruct((nb, c, c), jnp.float32),
        grid=(nb, nl),
        in_specs=[pl.BlockSpec((1, tl, c), lambda b, l: (b, l, 0))],
        out_specs=pl.BlockSpec((1, c, c), lambda b, l: (b, 0, 0)),
        scratch_shapes=[pltpu.VMEM((c, c), jnp.float32)],
        compiler_params=pltpu.CompilerParams(
            dimension_semantics=("parallel", "arbitrary")),
    )(f)


# ----------------------------------------------------------------------------
# Lane-dense tiled reductions / elementwise kernels
# ----------------------------------------------------------------------------

def _to_rows(x):
    flat = x.reshape(-1).astype(jnp.float32)
    s = flat.shape[0]
    r = -(-s // _LANE_COLS)
    tr = _ROW_BLOCK if r >= _ROW_BLOCK else _round_up(r, 8)
    rp = _round_up(r, tr)
    flat = jnp.pad(flat, (0, rp * _LANE_COLS - s))
    return flat.reshape(rp, _LANE_COLS), s, tr


def _l1_sum_kernel(a_ref, b_ref, o_ref):
    @pl.when(pl.program_id(0) == 0)
    def _():
        o_ref[...] = jnp.zeros_like(o_ref)
    o_ref[...] += jnp.sum(jnp.abs(a_ref[...] - b_ref[...]))


def l1_loss(a, b):
    a2, s, tr = _to_rows(a)
    b2, _, _ = _to_rows(b)
    n = a2.shape[0] // tr
    out = pl.pallas_call(
        _l1_sum_kernel,
        out_shape=jax.ShapeDtypeStruct((1, 1), jnp.float32),
        grid=(n,),
        in_specs=[pl.BlockSpec((tr, _LANE_COLS), lambda i: (i, 0))] * 2,
        out_specs=pl.BlockSpec((1, 1), lambda i: (0, 0)),
        compiler_params=pltpu.CompilerParams(dimension_semantics=("arbitrary",)),
    )(a2, b2)
    return out[0, 0] / s


def _paired_l1_sum_kernel(a_ref, b_ref, g_ref, o_ref):
    @pl.when(pl.program_id(0) == 0)
    def _():
        o_ref[...] = jnp.zeros_like(o_ref)
    g = g_ref[...]
    o_ref[...] += (jnp.sum(jnp.abs(a_ref[...] - g)) +
                   jnp.sum(jnp.abs(b_ref[...] - g)))


def paired_l1_loss(a, b, g):
    """l1(a, g) + l1(b, g), reading g from HBM once."""
    a2, s, tr = _to_rows(a)
    b2, _, _ = _to_rows(b)
    g2, _, _ = _to_rows(g)
    n = a2.shape[0] // tr
    out = pl.pallas_call(
        _paired_l1_sum_kernel,
        out_shape=jax.ShapeDtypeStruct((1, 1), jnp.float32),
        grid=(n,),
        in_specs=[pl.BlockSpec((tr, _LANE_COLS), lambda i: (i, 0))] * 3,
        out_specs=pl.BlockSpec((1, 1), lambda i: (0, 0)),
        compiler_params=pltpu.CompilerParams(dimension_semantics=("arbitrary",)),
    )(a2, b2, g2)
    return out[0, 0] / s


def _hole_valid_kernel(m_ref, a_ref, b_ref, oh_ref, ov_ref):
    @pl.when(pl.program_id(0) == 0)
    def _():
        oh_ref[...] = jnp.zeros_like(oh_ref)
        ov_ref[...] = jnp.zeros_like(ov_ref)
    m = m_ref[...]
    d = jnp.abs(a_ref[...] - b_ref[...])     # mask in [0,1]: |m*(a-b)| == m*|a-b|
    oh_ref[...] += jnp.sum((1.0 - m) * d)
    ov_ref[...] += jnp.sum(m * d)


def hole_valid_l1(mask, output, ground_truth):
    m2, s, tr = _to_rows(mask)
    a2, _, _ = _to_rows(output)
    b2, _, _ = _to_rows(ground_truth)
    n = m2.shape[0] // tr
    hole, valid = pl.pallas_call(
        _hole_valid_kernel,
        out_shape=(jax.ShapeDtypeStruct((1, 1), jnp.float32),
                   jax.ShapeDtypeStruct((1, 1), jnp.float32)),
        grid=(n,),
        in_specs=[pl.BlockSpec((tr, _LANE_COLS), lambda i: (i, 0))] * 3,
        out_specs=(pl.BlockSpec((1, 1), lambda i: (0, 0)),
                   pl.BlockSpec((1, 1), lambda i: (0, 0))),
        compiler_params=pltpu.CompilerParams(dimension_semantics=("arbitrary",)),
    )(m2, a2, b2)
    return hole[0, 0] / s, valid[0, 0] / s


def _compose_kernel(x_ref, m_ref, y_ref, o_ref):
    m = m_ref[...]
    o_ref[...] = x_ref[...] * m + y_ref[...] * (1.0 - m)


def compose(x, mask, y):
    shape = x.shape
    x2, s, tr = _to_rows(x)
    m2, _, _ = _to_rows(mask)
    y2, _, _ = _to_rows(y)
    n = x2.shape[0] // tr
    out = pl.pallas_call(
        _compose_kernel,
        out_shape=jax.ShapeDtypeStruct(x2.shape, jnp.float32),
        grid=(n,),
        in_specs=[pl.BlockSpec((tr, _LANE_COLS), lambda i: (i, 0))] * 3,
        out_specs=pl.BlockSpec((tr, _LANE_COLS), lambda i: (i, 0)),
        compiler_params=pltpu.CompilerParams(dimension_semantics=("parallel",)),
    )(x2, m2, y2)
    return out.reshape(-1)[:s].reshape(shape)


# ----------------------------------------------------------------------------
# Loss terms (mirroring loss.py)
# ----------------------------------------------------------------------------

def total_variation_loss(image):
    return (l1_loss(image[:, :, :, :-1], image[:, :, :, 1:]) +
            l1_loss(image[:, :, :-1, :], image[:, :, 1:, :]))


def calculate_loss(weights, input_x, mask, output, ground_truth, vgg_params,
                   netD=None):
    n = input_x.shape[0]
    composed = compose(input_x, mask, output)

    # Batch the three VGG passes (composed / output / ground_truth) into one
    # NHWC 3N-batch pass: one conv launch chain, shared weight reads.
    stacked = jnp.concatenate([composed, output, ground_truth], axis=0)
    feats = vgg_extract(jnp.transpose(stacked, (0, 2, 3, 1)), vgg_params)

    loss_dict = {}
    if weights['hole'] is not None or weights['valid'] is not None:
        hole, valid = hole_valid_l1(mask, output, ground_truth)
        if weights['hole'] is not None:
            loss_dict['hole'] = hole * weights['hole']
        if weights['valid'] is not None:
            loss_dict['valid'] = valid * weights['valid']
    if weights['perceptual'] is not None:
        p = jnp.float32(0.0)
        for f in feats:   # f[:n]=comp, f[n:2n]=out, f[2n:]=gt
            p = p + paired_l1_loss(f[n:2 * n], f[:n], f[2 * n:])
        loss_dict['perceptual'] = p * weights['perceptual']
    if weights['style'] is not None:
        s = jnp.float32(0.0)
        for f in feats:
            g = gram_matrix_nhwc(f)          # grams for all 3 passes in one call
            s = s + paired_l1_loss(g[n:2 * n], g[:n], g[2 * n:])
        loss_dict['style'] = s * weights['style']
    if weights['tv'] is not None:
        loss_dict['tv'] = total_variation_loss(composed) * weights['tv']
    if weights['gen_loss'] is not None and netD is not None:
        # TODO(synk): gen_loss needs an external discriminator netD; plain-JAX
        # softplus mean is used when one is supplied.
        g_fake = netD(composed)
        loss_dict['gen_loss'] = jnp.mean(jax.nn.softplus(-g_fake)) * weights['gen_loss']
    return loss_dict


# ----------------------------------------------------------------------------
# main
# ----------------------------------------------------------------------------

if __name__ == "__main__":
    key = jax.random.PRNGKey(0)
    k_params, k_in, k_out, k_gt, k_mask = jax.random.split(key, 5)

    N, C, H, W = 2, 3, 16, 16
    input_x = jax.random.normal(k_in, (N, C, H, W), jnp.float32)
    output = jax.random.normal(k_out, (N, C, H, W), jnp.float32)
    ground_truth = jax.random.normal(k_gt, (N, C, H, W), jnp.float32)
    mask = jax.random.bernoulli(k_mask, 0.7, (N, C, H, W)).astype(jnp.float32)

    vgg_params = init_vgg_params(k_params)

    weights = {
        'hole': 6.0,
        'valid': 1.0,
        'perceptual': 0.05,
        'style': 120.0,
        'tv': 0.1,
        'gen_loss': None,   # no external discriminator supplied
    }

    loss_dict = calculate_loss(weights, input_x, mask, output, ground_truth,
                               vgg_params, netD=None)
    loss_dict = jax.block_until_ready(loss_dict)
    print("KERNEL_OK")
</pallas_src>

<mosaic_0001>
module attributes {stable_mosaic.version = 11 : i64} {
  func.func @_compose_kernel(%arg0: i32, %arg1: memref<8x512xf32, #tpu.memory_space<vmem>>, %arg2: memref<8x512xf32, #tpu.memory_space<vmem>>, %arg3: memref<8x512xf32, #tpu.memory_space<vmem>>, %arg4: memref<8x512xf32, #tpu.memory_space<vmem>>) attributes {dimension_semantics = [#tpu.dimension_semantics<parallel>], iteration_bounds = array<i64: 1>, scalar_prefetch = 0 : i64, scratch_operands = 0 : i64, tpu.core_type = #tpu.core_type<tc>, window_params = [{transform_indices = @transform_0, window_bounds = array<i64: 8, 512>}, {transform_indices = @transform_1, window_bounds = array<i64: 8, 512>}, {transform_indices = @transform_2, window_bounds = array<i64: 8, 512>}, {transform_indices = @transform_3, window_bounds = array<i64: 8, 512>}]} {
    %c0 = arith.constant 0 : index
    %c0_0 = arith.constant 0 : index
    %0 = vector.load %arg2[%c0, %c0_0] : memref<8x512xf32, #tpu.memory_space<vmem>>, vector<8x512xf32>
    %c0_1 = arith.constant 0 : index
    %c0_2 = arith.constant 0 : index
    %1 = vector.load %arg1[%c0_1, %c0_2] : memref<8x512xf32, #tpu.memory_space<vmem>>, vector<8x512xf32>
    %2 = arith.mulf %1, %0 : vector<8x512xf32>
    %c0_3 = arith.constant 0 : index
    %c0_4 = arith.constant 0 : index
    %3 = vector.load %arg3[%c0_3, %c0_4] : memref<8x512xf32, #tpu.memory_space<vmem>>, vector<8x512xf32>
    %cst = arith.constant 1.000000e+00 : f32
    %4 = vector.broadcast %cst : f32 to vector<8x512xf32>
    %5 = arith.subf %4, %0 : vector<8x512xf32>
    %6 = arith.mulf %3, %5 : vector<8x512xf32>
    %7 = arith.addf %2, %6 : vector<8x512xf32>
    %c0_5 = arith.constant 0 : index
    %c0_6 = arith.constant 0 : index
    %8 = vector.load %arg4[%c0_5, %c0_6] : memref<8x512xf32, #tpu.memory_space<vmem>>, vector<8x512xf32>
    tpu.vector_store %arg4[%c0_5, %c0_6], %7 {strides = array<i32>} : memref<8x512xf32, #tpu.memory_space<vmem>>, vector<8x512xf32>,
    return
  }
  func.func @transform_0(%arg0: i32) -> (i32, i32) {
    %c0_i32 = arith.constant 0 : i32
    %c0_i32_0 = arith.constant 0 : i32
    return %arg0, %c0_i32 : i32, i32
  }
  func.func @transform_1(%arg0: i32) -> (i32, i32) {
    %c0_i32 = arith.constant 0 : i32
    %c0_i32_0 = arith.constant 0 : i32
    return %arg0, %c0_i32 : i32, i32
  }
  func.func @transform_2(%arg0: i32) -> (i32, i32) {
    %c0_i32 = arith.constant 0 : i32
    %c0_i32_0 = arith.constant 0 : i32
    return %arg0, %c0_i32 : i32, i32
  }
  func.func @transform_3(%arg0: i32) -> (i32, i32) {
    %c0_i32 = arith.constant 0 : i32
    %c0_i32_0 = arith.constant 0 : i32
    return %arg0, %c0_i32 : i32, i32
  }
}

</mosaic_0001>

<bundles_post_ra>
// kernel: tpu_custom_call.1
= control target key start
LH: loop header
LB: loop body
LE: loop exit
PB: predicated region body
PF: predicated region fallthrough
CT: control target
= control target key end

     0   :  { %8 = vsyncpa [#allocation3], 0  ;;  %s268_s0 = inlined_call_operand.hbm [shape: f32[8,512], index: 0, kind: input, shape index: {}]   ;;  %s269_s1 = inlined_call_operand.hbm [shape: f32[8,512], index: 1, kind: input, shape index: {}]   ;;  %s270_s2 = inlined_call_operand.hbm [shape: f32[8,512], index: 2, kind: input, shape index: {}]   ;;  %s271_s3 = inlined_call_operand.hbm [shape: f32[8,512], index: 3, kind: output, shape index: {}]  }
   0x1   :  { %9 = vsyncpa [#allocation6], 0 }
   0x2   :  { %10 = vsyncpa [#allocation4], 0  ;;  %s196_s12 = smov [#allocation5]   ;;  %s197_s14 = smov [#allocation2]  }
   0x3   :  { %s27_s13 = sshll.u32 %s196_s12, 4  ;;  %s17_s15 = sshll.u32 %s197_s14, 4  ;;  %s28_s13 = int_to_ptr.vmem [resolvable:$true] %s27_s13  ;;  %s18_s15 = int_to_ptr.vmem [resolvable:$true] %s17_s15 }
   0x4   :  { %s102_s18 = scalar_lea.hbm %s269_s1, 512 }
   0x5   :  { %p103_p0 = scmp.ne.s32.totalorder %s269_s1, %s102_s18  ;;  %p106_p1 = scmp.lt.u32.totalorder %s102_s18, %s269_s1 }
   0x7   :  { %p108_p2 = pnand %p106_p1, %p103_p0 }
   0x9   :  { %111 = shalt.err (!%p108_p2)
}
   0xa   :  { %s112_s23 = scalar_lea.vmem %s28_s13, 512  ;;  %p117_p4 = scmp.lt.s32.totalorder %s28_s13, %s28_s13 }
   0xb   :  { %p113_p3 = scmp.ne.s32.totalorder %s28_s13, %s112_s23  ;;  %p118_p5 = scmp.lt.s32.totalorder %s112_s23, %s112_s23 }
   0xd   :  { %p119_p6 = por %p118_p5, %p117_p4 }
   0xf   :  { %p120_p7 = pnand %p119_p6, %p113_p3 }
  0x11   :  { %123 = shalt.err (!%p120_p7)
}
  0x12   :  { %30 = dma.hbm_to_vmem [thread:$0]  %s269_s1, 512, %s28_s13, [#allocation6]  }
  0x13   :  { %s124_s28 = scalar_lea.hbm %s268_s0, 512 }
  0x14   :  { %p125_p8 = scmp.ne.s32.totalorder %s268_s0, %s124_s28  ;;  %p128_p9 = scmp.lt.u32.totalorder %s124_s28, %s268_s0 }
  0x16   :  { %p130_p10 = pnand %p128_p9, %p125_p8 }
  0x18   :  { %133 = shalt.err (!%p130_p10)
}
  0x19   :  { %s134_s6 = scalar_lea.vmem %s18_s15, 512  ;;  %p139_p12 = scmp.lt.s32.totalorder %s18_s15, %s18_s15 }
  0x1a   :  { %p135_p11 = scmp.ne.s32.totalorder %s18_s15, %s134_s6  ;;  %p140_p13 = scmp.lt.s32.totalorder %s134_s6, %s134_s6 }
  0x1c   :  { %p141_p0 = por %p140_p13, %p139_p12 }
  0x1e   :  { %p142_p1 = pnand %p141_p0, %p135_p11 }
  0x20   :  { %145 = shalt.err (!%p142_p1)
}
  0x21   :  { %20 = dma.hbm_to_vmem [thread:$0]  %s268_s0, 512, %s18_s15, [#allocation3]  }
  0x22   :  { %s198_s8 = smov [#allocation7]   ;;  %s146_s12 = scalar_lea.hbm %s270_s2, 512 }
  0x23   :  { %s37_s9 = sshll.u32 %s198_s8, 4  ;;  %p147_p2 = scmp.ne.s32.totalorder %s270_s2, %s146_s12  ;;  %s38_s9 = int_to_ptr.vmem [resolvable:$true] %s37_s9 }
  0x24   :  { %p150_p3 = scmp.lt.u32.totalorder %s146_s12, %s270_s2 }
  0x26   :  { %p152_p4 = pnand %p150_p3, %p147_p2 }
  0x28   :  { %155 = shalt.err (!%p152_p4)
}
  0x29   :  { %s156_s18 = scalar_lea.vmem %s38_s9, 512  ;;  %p161_p6 = scmp.lt.s32.totalorder %s38_s9, %s38_s9 }
  0x2a   :  { %p157_p5 = scmp.ne.s32.totalorder %s38_s9, %s156_s18  ;;  %p162_p7 = scmp.lt.s32.totalorder %s156_s18, %s156_s18 }
  0x2c   :  { %p163_p8 = por %p162_p7, %p161_p6 }
  0x2e   :  { %p164_p9 = pnand %p163_p8, %p157_p5 }
  0x30   :  { %167 = shalt.err (!%p164_p9)
}
  0x31   :  { %40 = dma.hbm_to_vmem [thread:$0]  %s270_s2, 512, %s38_s9, [#allocation6]  }
  0x32   :  { %190 = dma.done.wait [#allocation3], 512  }
  0x33   :  { %191 = vsyncadd [#allocation3], 4294966784 }
  0x34   :  { %192 = dma.done.wait [#allocation6], 1024  }
  0x35   :  { %193 = vsyncadd [#allocation6], 4294966272  ;;  %v50_v0 = vld [vmem:[#allocation5] sm:$0xff]  ;;  %v51_v5 = vld [vmem:[#allocation5 + $0x8] sm:$0xff]  ;;  %s199_s2 = smov [#allocation8]  }
  0x36   :  { %v54_v1 = vld [vmem:[#allocation2] sm:$0xff]  ;;  %v66_v4 = vsub.f32 1.0, %v50_v0  ;;  %v55_v6 = vld [vmem:[#allocation2 + $0x8] sm:$0xff]  ;;  %v67_v9 = vsub.f32 1.0, %v51_v5  ;;  %v52_v10 = vld [vmem:[#allocation5 + $0x10] sm:$0xff]  ;;  %s88_s19 = sshll.u32 %s199_s2, 4  ;;  %s89_s19 = int_to_ptr.vmem [resolvable:$true] %s88_s19 }
  0x37   :  { %v62_v2 = vld [vmem:[#allocation7] sm:$0xff]  ;;  %v58_v3 = vmul.f32 %v54_v1, %v50_v0  ;;  %v63_v7 = vld [vmem:[#allocation7 + $0x8] sm:$0xff]  ;;  %v59_v8 = vmul.f32 %v55_v6, %v51_v5  ;;  %v56_v11 = vld [vmem:[#allocation2 + $0x10] sm:$0xff]  ;;  %v68_v15 = vsub.f32 1.0, %v52_v10  ;;  %s168_s20 = scalar_lea.vmem %s89_s19, 512  ;;  %p173_p11 = scmp.lt.s32.totalorder %s89_s19, %s89_s19 }
  0x38   :  { %v64_v12 = vld [vmem:[#allocation7 + $0x10] sm:$0xff]  ;;  %v70_v13 = vmul.f32 %v66_v4, %v62_v2  ;;  %v60_v14 = vmul.f32 %v56_v11, %v52_v10  ;;  %v53_v16 = vld [vmem:[#allocation5 + $0x18] sm:$0xff]  ;;  %v71_v19 = vmul.f32 %v67_v9, %v63_v7  ;;  %p169_p10 = scmp.ne.s32.totalorder %s89_s19, %s168_s20  ;;  %p174_p12 = scmp.lt.s32.totalorder %s168_s20, %s168_s20 }
  0x39   :  { %v57_v17 = vld [vmem:[#allocation2 + $0x18] sm:$0xff]  ;;  %v69_v21 = vsub.f32 1.0, %v53_v16  ;;  %v72_v23 = vmul.f32 %v68_v15, %v64_v12 }
  0x3a   :  { %v65_v18 = vld [vmem:[#allocation7 + $0x18] sm:$0xff]  ;;  %v61_v20 = vmul.f32 %v57_v17, %v53_v16  ;;  %v74_v22 = vadd.f32 %v70_v13, %v58_v3  ;;  %v75_v24 = vadd.f32 %v71_v19, %v59_v8  ;;  %p175_p13 = por %p174_p12, %p173_p11 }
  0x3b   :  { %v73_v25 = vmul.f32 %v69_v21, %v65_v18  ;;  %v76_v26 = vadd.f32 %v72_v23, %v60_v14 }
  0x3c   :  { %78 = vst [vmem:[#allocation8] sm:$0xff] %v74_v22  ;;  %79 = vst [vmem:[#allocation8 + $0x8] sm:$0xff] %v75_v24  ;;  %p176_p0 = pnand %p175_p13, %p169_p10 }
  0x3d   :  { %v77_v27 = vadd.f32 %v73_v25, %v61_v20  ;;  %80 = vst [vmem:[#allocation8 + $0x10] sm:$0xff] %v76_v26 }
  0x3f   :  { %81 = vst [vmem:[#allocation8 + $0x18] sm:$0xff] %v77_v27 }
  0x40   :  { %179 = shalt.err (!%p176_p0)
}
  0x41   :  { %s180_s23 = scalar_lea.hbm %s271_s3, 512 }
  0x42   :  { %p181_p1 = scmp.ne.s32.totalorder %s271_s3, %s180_s23  ;;  %p184_p2 = scmp.lt.u32.totalorder %s180_s23, %s271_s3 }
  0x44   :  { %p186_p3 = pnand %p184_p2, %p181_p1 }
  0x46   :  { %189 = shalt.err (!%p186_p3)
}
  0x47   :  { %91 = dma.vmem_to_hbm [thread:$0]  %s89_s19, 512, %s271_s3, [#allocation4]  }
  0x48   :  { %194 = dma.done.wait [#allocation4], 512  }
  0x49   :  { %195 = vsyncadd [#allocation4], 4294966784 }
  0x4a   :  { %95 = vsyncpa [#allocation3], 1 }
  0x4b   :  { %96 = vsyncpa [#allocation6], 1 }
  0x4c   :  { %97 = vsyncpa [#allocation4], 1 }

</bundles_post_ra>
